<compile_context>
chip_gen: v7x
topology: tpu7x:2x2x1
jax: 0.10.0
libtpu: 0.0.40
codegen_flags: <defaults>
</compile_context>

<pallas_src>
import functools

import jax
import jax.numpy as jnp
from jax.experimental import pallas as pl
from jax.experimental.pallas import tpu as pltpu

# logical dims of the PyTorch module
D_IN, D_H1, D_H2 = 166, 100, 33
K_CONV, STRIDE = 37, 3
D_CV = (D_H2 - 1) * STRIDE + K_CONV      # 133 = ConvTranspose1d output length
D_OUT = 163
P_CV = 256                               # fused intermediate padded to a lane multiple
MAX_TILE_B = 2048                        # max batch rows per grid step


def _round_up(n, m):
    return ((n + m - 1) // m) * m


def conv_transpose_as_matrix(taps):
    """(37,) ConvTranspose1d taps -> dense (33,133) matrix M with
    out[j] = sum_i x[i] * taps[j - 3*i]   (stride=3, padding=0, dilation=1)."""
    i = jnp.arange(D_H2)[:, None]            # input positions
    j = jnp.arange(D_CV)[None, :]            # output positions
    t = j - STRIDE * i
    valid = (t >= 0) & (t < K_CONV)
    return jnp.where(valid, taps[jnp.clip(t, 0, K_CONV - 1)], 0.0)


# ---------------------------------------------------------------------------
# Kernel: relu -> fused-affine matmul -> relu -> output matmul (2 MXU dots).
# ---------------------------------------------------------------------------
def nn4_kernel(x_ref, wa_ref, ba_ref, wb_ref, bb_ref, o_ref):
    # x = relu(x)   (f32, exact), then bf16 for the MXU
    h = jnp.maximum(x_ref[...], 0.0).astype(jnp.bfloat16)
    # fused input->hidden1->Tconv1d affine map: one (166, 256) matmul + bias
    h = jnp.dot(h, wa_ref[...], preferred_element_type=jnp.float32) + ba_ref[...]
    # x = relu(x)   (padded cols 133..255 are exactly 0 -> stay 0)
    h = jnp.maximum(h, 0.0)
    # x = self.output(x) : Linear(133,163)  (rows 133..255 of wb are zero)
    h = jnp.dot(h.astype(jnp.bfloat16), wb_ref[...],
                preferred_element_type=jnp.float32) + bb_ref[...]
    o_ref[...] = h.astype(o_ref.dtype)


# ---------------------------------------------------------------------------
# Wrapper: batch-tiled grid, weights VMEM-resident, no feature-dim padding passes.
# ---------------------------------------------------------------------------
@functools.partial(jax.jit, static_argnames=("max_tile_b",))
def nn4_forward(x, prep, *, max_tile_b=MAX_TILE_B):
    """x: (B, 1, 166) or (B, 166) float32 -> output matching the PyTorch shape."""
    had_channel = (x.ndim == 3)
    if had_channel:
        B, C, _ = x.shape
        x2 = x.reshape(B * C, D_IN)
    else:
        x2 = x
    B2 = x2.shape[0]

    # Only tiny batches (<8 rows) get row-padded; for typical batches this is a no-op.
    b_pad = max(_round_up(B2, 8), 8) if B2 < 8 else B2
    xp = jnp.pad(x2.astype(jnp.float32), ((0, b_pad - B2), (0, 0)))

    # Large tiles amortize the ~0.35us/step overhead; aim for >= 2 grid steps so
    # v7x can shard the "parallel" batch axis across its 2 TensorCores.
    tile_b = min(max_tile_b, max(8, _round_up(pl.cdiv(b_pad, 2), 8)))
    grid = (pl.cdiv(b_pad, tile_b),)

    row_map = lambda i: (i, 0)        # x / out tiles stream over the batch
    const_map = lambda i: (0, 0)      # weights & biases: DMA'd once, VMEM-resident

    in_specs = [
        pl.BlockSpec((tile_b, D_IN), row_map),     # x  (f32, natural 166-wide)
        pl.BlockSpec((D_IN, P_CV), const_map),     # wa (bf16 fused affine)
        pl.BlockSpec((1, P_CV), const_map),        # ba (f32 fused bias)
        pl.BlockSpec((P_CV, D_OUT), const_map),    # wb (bf16 output weight)
        pl.BlockSpec((1, D_OUT), const_map),       # bb (f32 output bias)
    ]
    out_specs = pl.BlockSpec((tile_b, D_OUT), row_map)

    flops = 2 * b_pad * (D_IN * D_CV + D_CV * D_OUT)
    bytes_accessed = (b_pad * (D_IN + D_OUT) * 4
                      + 2 * (D_IN * P_CV + P_CV * D_OUT)
                      + 4 * (P_CV + D_OUT))

    out = pl.pallas_call(
        nn4_kernel,
        out_shape=jax.ShapeDtypeStruct((b_pad, D_OUT), jnp.float32),
        grid=grid,
        in_specs=in_specs,
        out_specs=out_specs,
        compiler_params=pltpu.CompilerParams(
            dimension_semantics=("parallel",),
            # tile_b<=2048: ~15 MiB peak (x/out double-buffered + weights +
            # intermediates) -- comfortably under 32 MiB on v5e/v6e/v7x.
            vmem_limit_bytes=32 * 1024 * 1024),
        cost_estimate=pl.CostEstimate(
            flops=flops, transcendentals=0, bytes_accessed=bytes_accessed),
    )(xp, prep["wa"], prep["ba"], prep["wb"], prep["bb"])

    out = out[:B2]
    if had_channel:
        out = out.reshape(B, C, D_OUT)
    return out


# ---------------------------------------------------------------------------
# Parameter construction (PyTorch-style init) and fused/padded prep.
# ---------------------------------------------------------------------------
def init_params(key):
    def unif(k, shape, bound):
        return jax.random.uniform(k, shape, jnp.float32, -bound, bound)

    k1, k2, k3, k4, k5, k6, k7, k8 = jax.random.split(key, 8)
    return {
        # Linear weights stored pre-transposed as (in, out)
        "w1": unif(k1, (D_IN, D_H1), D_IN ** -0.5),
        "b1": unif(k2, (1, D_H1), D_IN ** -0.5),
        "w2": unif(k3, (D_H1, D_H2), D_H1 ** -0.5),
        "b2": unif(k4, (1, D_H2), D_H1 ** -0.5),
        # ConvTranspose1d(1,1,37): 37 taps + scalar bias
        "wct": unif(k5, (K_CONV,), K_CONV ** -0.5),
        "bct": unif(k6, (1,), K_CONV ** -0.5),
        "w3": unif(k7, (D_CV, D_OUT), D_CV ** -0.5),
        "b3": unif(k8, (1, D_OUT), D_CV ** -0.5),
    }


def prepare_params(params):
    """Collapse input->hidden1->Tconv1d into one affine map (exact in f32),
    zero-pad the intermediate dim to 256 lanes, cast weights to bf16."""
    wc = conv_transpose_as_matrix(params["wct"])                       # (33, 133)
    w_fused = params["w1"] @ params["w2"] @ wc                          # (166, 133)
    b_fused = (params["b1"] @ params["w2"] + params["b2"]) @ wc + params["bct"][0]

    wa = jnp.zeros((D_IN, P_CV), jnp.float32).at[:, :D_CV].set(w_fused)
    ba = jnp.zeros((1, P_CV), jnp.float32).at[:, :D_CV].set(b_fused)
    wb = jnp.zeros((P_CV, D_OUT), jnp.float32).at[:D_CV, :].set(params["w3"])
    return {
        "wa": wa.astype(jnp.bfloat16),
        "ba": ba,                               # f32
        "wb": wb.astype(jnp.bfloat16),
        "bb": params["b3"],                     # (1, 163) f32
    }


# ---------------------------------------------------------------------------
# References
# ---------------------------------------------------------------------------
def reference_forward_f32(x, params):
    """Pure-f32 jnp replica of NeuralNetwork4.forward (no fusion)."""
    B = x.shape[0]
    h = jnp.maximum(x.reshape(-1, D_IN), 0.0)
    h = h @ params["w1"] + params["b1"]
    h = h @ params["w2"] + params["b2"]
    h = h @ conv_transpose_as_matrix(params["wct"]) + params["bct"][0]
    h = jnp.maximum(h, 0.0)
    h = h @ params["w3"] + params["b3"]
    return h.reshape(B, 1, D_OUT)


def reference_forward_bf16(x, prep):
    """jnp replica using exactly the kernel's fused bf16 weights / f32 accumulation."""
    B = x.shape[0]
    h = jnp.maximum(x.reshape(-1, D_IN), 0.0).astype(jnp.bfloat16)
    h = jnp.dot(h, prep["wa"], preferred_element_type=jnp.float32) + prep["ba"]
    h = jnp.maximum(h, 0.0)
    h = jnp.dot(h.astype(jnp.bfloat16), prep["wb"],
                preferred_element_type=jnp.float32) + prep["bb"]
    return h.reshape(B, 1, D_OUT)


if __name__ == "__main__":
    key = jax.random.PRNGKey(0)
    key, kx = jax.random.split(key)
    batch = 4
    x = jax.random.normal(kx, (batch, 1, D_IN), jnp.float32)

    params = init_params(key)
    prep = prepare_params(params)

    out = jax.block_until_ready(nn4_forward(x, prep))
    assert out.shape == (batch, 1, D_OUT), out.shape

    ref_bf16 = reference_forward_bf16(x, prep)
    ref_f32 = reference_forward_f32(x, params)
    assert jnp.allclose(out, ref_bf16, atol=5e-3, rtol=5e-3), \
        f"bf16-ref mismatch, max abs diff {float(jnp.max(jnp.abs(out - ref_bf16)))}"
    assert jnp.allclose(out, ref_f32, atol=7e-2, rtol=7e-2), \
        f"f32-ref mismatch, max abs diff {float(jnp.max(jnp.abs(out - ref_f32)))}"

    print("KERNEL_OK")
</pallas_src>

<mosaic_0001>
module attributes {stable_mosaic.version = 11 : i64} {
  func.func @nn4_kernel(%arg0: i32, %arg1: memref<8x166xf32, #tpu.memory_space<vmem>>, %arg2: memref<166x256xbf16, #tpu.memory_space<vmem>>, %arg3: memref<1x256xf32, #tpu.memory_space<vmem>>, %arg4: memref<256x163xbf16, #tpu.memory_space<vmem>>, %arg5: memref<1x163xf32, #tpu.memory_space<vmem>>, %arg6: memref<8x163xf32, #tpu.memory_space<vmem>>) attributes {dimension_semantics = [#tpu.dimension_semantics<parallel>], iteration_bounds = array<i64: 1>, scalar_prefetch = 0 : i64, scratch_operands = 0 : i64, tpu.core_type = #tpu.core_type<tc>, window_params = [{transform_indices = @transform_0, window_bounds = array<i64: 8, 166>}, {pipeline_mode = #tpu.pipeline_mode<synchronous>, transform_indices = @transform_1, window_bounds = array<i64: 166, 256>}, {pipeline_mode = #tpu.pipeline_mode<synchronous>, transform_indices = @transform_2, window_bounds = array<i64: 1, 256>}, {pipeline_mode = #tpu.pipeline_mode<synchronous>, transform_indices = @transform_3, window_bounds = array<i64: 256, 163>}, {pipeline_mode = #tpu.pipeline_mode<synchronous>, transform_indices = @transform_4, window_bounds = array<i64: 1, 163>}, {transform_indices = @transform_5, window_bounds = array<i64: 8, 163>}]} {
    %c0 = arith.constant 0 : index
    %c0_0 = arith.constant 0 : index
    %0 = vector.load %arg1[%c0, %c0_0] : memref<8x166xf32, #tpu.memory_space<vmem>>, vector<8x166xf32>
    %cst = arith.constant 0.000000e+00 : f32
    %1 = vector.broadcast %cst : f32 to vector<8x166xf32>
    %2 = arith.maximumf %0, %1 : vector<8x166xf32>
    %3 = arith.truncf %2 : vector<8x166xf32> to vector<8x166xbf16>
    %c0_1 = arith.constant 0 : index
    %c0_2 = arith.constant 0 : index
    %4 = vector.load %arg2[%c0_1, %c0_2] : memref<166x256xbf16, #tpu.memory_space<vmem>>, vector<166x256xbf16>
    %cst_3 = arith.constant dense<0.000000e+00> : vector<8x256xf32>
    %5 = tpu.matmul %3, %4, %cst_3 {dimension_numbers = #tpu.dot_dimension_numbers<[1], [0], [0], [1], [0, 0, 1, 1], [], []>} : vector<8x166xbf16>, vector<166x256xbf16>, vector<8x256xf32> -> vector<8x256xf32>
    %c0_4 = arith.constant 0 : index
    %c0_5 = arith.constant 0 : index
    %6 = vector.load %arg3[%c0_4, %c0_5] : memref<1x256xf32, #tpu.memory_space<vmem>>, vector<1x256xf32>
    %7 = vector.broadcast %6 : vector<1x256xf32> to vector<8x256xf32>
    %8 = arith.addf %5, %7 : vector<8x256xf32>
    %cst_6 = arith.constant 0.000000e+00 : f32
    %9 = vector.broadcast %cst_6 : f32 to vector<8x256xf32>
    %10 = arith.maximumf %8, %9 : vector<8x256xf32>
    %11 = arith.truncf %10 : vector<8x256xf32> to vector<8x256xbf16>
    %c0_7 = arith.constant 0 : index
    %c0_8 = arith.constant 0 : index
    %12 = vector.load %arg4[%c0_7, %c0_8] : memref<256x163xbf16, #tpu.memory_space<vmem>>, vector<256x163xbf16>
    %cst_9 = arith.constant dense<0.000000e+00> : vector<8x163xf32>
    %13 = tpu.matmul %11, %12, %cst_9 {dimension_numbers = #tpu.dot_dimension_numbers<[1], [0], [0], [1], [0, 0, 1, 1], [], []>} : vector<8x256xbf16>, vector<256x163xbf16>, vector<8x163xf32> -> vector<8x163xf32>
    %c0_10 = arith.constant 0 : index
    %c0_11 = arith.constant 0 : index
    %14 = vector.load %arg5[%c0_10, %c0_11] : memref<1x163xf32, #tpu.memory_space<vmem>>, vector<1x163xf32>
    %15 = vector.broadcast %14 : vector<1x163xf32> to vector<8x163xf32>
    %16 = arith.addf %13, %15 : vector<8x163xf32>
    %c0_12 = arith.constant 0 : index
    %c0_13 = arith.constant 0 : index
    %17 = vector.load %arg6[%c0_12, %c0_13] : memref<8x163xf32, #tpu.memory_space<vmem>>, vector<8x163xf32>
    tpu.vector_store %arg6[%c0_12, %c0_13], %16 {strides = array<i32>} : memref<8x163xf32, #tpu.memory_space<vmem>>, vector<8x163xf32>,
    return
  }
  func.func @transform_0(%arg0: i32) -> (i32, i32) {
    %c0_i32 = arith.constant 0 : i32
    %c0_i32_0 = arith.constant 0 : i32
    return %arg0, %c0_i32 : i32, i32
  }
  func.func @transform_1(%arg0: i32) -> (i32, i32) {
    %c0_i32 = arith.constant 0 : i32
    %c0_i32_0 = arith.constant 0 : i32
    %c0_i32_1 = arith.constant 0 : i32
    return %c0_i32, %c0_i32_0 : i32, i32
  }
  func.func @transform_2(%arg0: i32) -> (i32, i32) {
    %c0_i32 = arith.constant 0 : i32
    %c0_i32_0 = arith.constant 0 : i32
    %c0_i32_1 = arith.constant 0 : i32
    return %c0_i32, %c0_i32_0 : i32, i32
  }
  func.func @transform_3(%arg0: i32) -> (i32, i32) {
    %c0_i32 = arith.constant 0 : i32
    %c0_i32_0 = arith.constant 0 : i32
    %c0_i32_1 = arith.constant 0 : i32
    return %c0_i32, %c0_i32_0 : i32, i32
  }
  func.func @transform_4(%arg0: i32) -> (i32, i32) {
    %c0_i32 = arith.constant 0 : i32
    %c0_i32_0 = arith.constant 0 : i32
    %c0_i32_1 = arith.constant 0 : i32
    return %c0_i32, %c0_i32_0 : i32, i32
  }
  func.func @transform_5(%arg0: i32) -> (i32, i32) {
    %c0_i32 = arith.constant 0 : i32
    %c0_i32_0 = arith.constant 0 : i32
    return %arg0, %c0_i32 : i32, i32
  }
}

</mosaic_0001>

<bundles_post_ra>
// kernel: nn4_forward.1
= control target key start
LH: loop header
LB: loop body
LE: loop exit
PB: predicated region body
PF: predicated region fallthrough
CT: control target
= control target key end

     0   :  { %vm165_vm0 = vcmask 310272   ;;  %vm169_vm1 = vcmask 1042432   ;;  %v50_v62 = vlaneseq  ;;  %vm467_vm2 = vcmask 285696   ;;  %s816_s1 = inlined_call_operand.vmem [shape: bf16[166,256], index: 1, kind: input, shape index: {}]   ;;  %s817_s0 = inlined_call_operand.vmem [shape: f32[8,166], index: 0, kind: input, shape index: {}]   ;;  %s818_s3 = inlined_call_operand.vmem [shape: bf16[256,163], index: 3, kind: input, shape index: {}]   ;;  %s819_s2 = inlined_call_operand.vmem [shape: f32[1,256], index: 2, kind: input, shape index: {}]   ;;  %s820_s4 = inlined_call_operand.vmem [shape: f32[1,163], index: 4, kind: input, shape index: {}]   ;;  %s821_s5 = inlined_call_operand.vmem [shape: f32[8,163], index: 5, kind: output, shape index: {}]  }
   0x1   :  { %v529_v0 = vld [vmem:[%s816_s1 + $0x4] ss:$8 sps:$4 sm:$0xff]   ;;  %v531_v1 = vld [vmem:[%s816_s1] ss:$8 sps:$4 sm:$0xff]   ;;  %v532_v2 = vld [vmem:[%s816_s1 + $0x14] ss:$8 sps:$4 sm:$0xff]  }
   0x2   :  { %176 = vmatprep.subr.bf16.mxu0 %v529_v0  ;;  %v534_v3 = vld [vmem:[%s816_s1 + $0x10] ss:$8 sps:$4 sm:$0xff]   ;;  %v535_v4 = vld [vmem:[%s816_s1 + $0x24] ss:$8 sps:$4 sm:$0xff]   ;;  %v537_v5 = vld [vmem:[%s816_s1 + $0x20] ss:$8 sps:$4 sm:$0xff]  }
   0x3   :  { %177 = vmatpush1.bf16.msra.mxu0 %v531_v1  ;;  %v538_v6 = vld [vmem:[%s816_s1 + $0x34] ss:$8 sps:$4 sm:$0xff]   ;;  %v540_v7 = vld [vmem:[%s816_s1 + $0x30] ss:$8 sps:$4 sm:$0xff]   ;;  %v541_v8 = vld [vmem:[%s816_s1 + $0x44] ss:$8 sps:$4 sm:$0xff]  }
   0x4   :  { %178 = vmatprep.subr.bf16.mxu0 %v532_v2  ;;  %v543_v9 = vld [vmem:[%s816_s1 + $0x40] ss:$8 sps:$4 sm:$0xff]   ;;  %v561_v12 = vld [vmem:[%s818_s3 + $0x4] ss:$8 sps:$4 sm:$0xff]   ;;  %v544_v14 = vld [vmem:[%s816_s1 + $0x54] ss:$8 sps:$4 sm:$0xff]  }
   0x5   :  { %v22_v10 = vld [vmem:[%s817_s0 + $0x8] sm:$0xff]  ;;  %v564_v15 = vld [vmem:[%s818_s3 + $0x14] ss:$8 sps:$4 sm:$0xff]   ;;  %425 = vmatprep.subr.bf16.mxu1 %v561_v12  ;;  %v566_v17 = vld [vmem:[%s818_s3 + $0x10] ss:$8 sps:$4 sm:$0xff]   ;;  %v51_v63 = vshrl.u32 %v50_v62, 7 }
   0x6   :  { %v24_v11 = vmax.f32 %v22_v10, 0.0  ;;  %v563_v13 = vld [vmem:[%s818_s3] ss:$8 sps:$4 sm:$0xff]   ;;  %v546_v18 = vld [vmem:[%s816_s1 + $0x50] ss:$8 sps:$4 sm:$0xff]  }
   0x7   :  { %179 = vmatpush1.bf16.msra.mxu0 %v534_v3  ;;  %426 = vmatpush1.bf16.msra.mxu1 %v563_v13  ;;  %v567_v19 = vld [vmem:[%s818_s3 + $0x24] ss:$8 sps:$4 sm:$0xff]   ;;  %v569_v21 = vld [vmem:[%s818_s3 + $0x20] ss:$8 sps:$4 sm:$0xff]   ;;  %v570_v23 = vld [vmem:[%s818_s3 + $0x34] ss:$8 sps:$4 sm:$0xff]  }
   0x8   :  { %180 = vmatprep.subr.bf16.mxu0 %v535_v4  ;;  %v26_v16 = vpack.c.bf16 %v24_v11, %v24_v11  ;;  %v547_v20 = vld [vmem:[%s816_s1 + $0x64] ss:$8 sps:$4 sm:$0xff]   ;;  %427 = vmatprep.subr.bf16.mxu1 %v564_v15  ;;  %v549_v22 = vld [vmem:[%s816_s1 + $0x60] ss:$8 sps:$4 sm:$0xff]   ;;  %v550_v24 = vld [vmem:[%s816_s1 + $0x74] ss:$8 sps:$4 sm:$0xff]  }
   0x9   :  { %v572_v25 = vld [vmem:[%s818_s3 + $0x30] ss:$8 sps:$4 sm:$0xff]   ;;  %v573_v27 = vld [vmem:[%s818_s3 + $0x44] ss:$8 sps:$4 sm:$0xff]   ;;  %v575_v29 = vld [vmem:[%s818_s3 + $0x40] ss:$8 sps:$4 sm:$0xff]  }
   0xa   :  { %496 = vmatprep.mubr.msk.bf16.mxu0 %vm165_vm0, %v26_v16  ;;  %v552_v26 = vld [vmem:[%s816_s1 + $0x70] ss:$8 sps:$4 sm:$0xff]   ;;  %v553_v28 = vld [vmem:[%s816_s1 + $0x84] ss:$8 sps:$4 sm:$0xff]   ;;  %v555_v30 = vld [vmem:[%s816_s1 + $0x80] ss:$8 sps:$4 sm:$0xff]  }
   0xb   :  { %181 = vmatpush1.bf16.msra.mxu0 %v537_v5  ;;  %428 = vmatpush1.bf16.msra.mxu1 %v566_v17  ;;  %v576_v31 = vld [vmem:[%s818_s3 + $0x54] ss:$8 sps:$4 sm:$0xff]   ;;  %v47_v33 = vld [vmem:[%s816_s1 + $0xa0] sm:$0x77]  ;;  %v578_v34 = vld [vmem:[%s818_s3 + $0x50] ss:$8 sps:$4 sm:$0xff]  }
   0xc   :  { %182 = vmatprep.subr.bf16.mxu0 %v538_v6  ;;  %429 = vmatprep.subr.bf16.mxu1 %v567_v19  ;;  %v556_v32 = vld [vmem:[%s816_s1 + $0x94] ss:$8 sps:$4 sm:$0xff]   ;;  %v558_v35 = vld [vmem:[%s816_s1 + $0x90] ss:$8 sps:$4 sm:$0xff]   ;;  %v21_v36 = vld [vmem:[%s817_s0] sm:$0xff]  ;;  %v494_v38 = vcombine.high %v47_v33, %v47_v33  ;;  %v493_v39 = vcombine.low %v47_v33, %v47_v33  ;;  %v52_v0 = vsub.s32 0, %v51_v63 }
   0xd   :  { %v579_v37 = vld [vmem:[%s818_s3 + $0x64] ss:$8 sps:$4 sm:$0xff]   ;;  %v23_v40 = vmax.f32 %v21_v36, 0.0  ;;  %v581_v41 = vld [vmem:[%s818_s3 + $0x60] ss:$8 sps:$4 sm:$0xff]   ;;  %v56_v2 = vsub.s32 1, %v51_v63 }
   0xe   :  { %v582_v42 = vld [vmem:[%s818_s3 + $0x74] ss:$8 sps:$4 sm:$0xff]   ;;  %v171_v43 = vsel %vm169_vm1, %v493_v39, 0  ;;  %v584_v45 = vld [vmem:[%s818_s3 + $0x70] ss:$8 sps:$4 sm:$0xff]  }
   0xf   :  { %183 = vmatpush1.bf16.msra.mxu0 %v540_v7  ;;  %430 = vmatpush1.bf16.msra.mxu1 %v569_v21  ;;  %v25_v44 = vpack.c.bf16 %v23_v40, %v23_v40  ;;  %v585_v46 = vld [vmem:[%s818_s3 + $0x84] ss:$8 sps:$4 sm:$0xff]   ;;  %v587_v47 = vld [vmem:[%s818_s3 + $0x80] ss:$8 sps:$4 sm:$0xff]   ;;  %v588_v48 = vld [vmem:[%s818_s3 + $0x94] ss:$8 sps:$4 sm:$0xff]  }
  0x10   :  { %184 = vmatprep.subr.bf16.mxu0 %v541_v8  ;;  %431 = vmatprep.subr.bf16.mxu1 %v570_v23  ;;  %v590_v49 = vld [vmem:[%s818_s3 + $0x90] ss:$8 sps:$4 sm:$0xff]   ;;  %v591_v50 = vld [vmem:[%s818_s3 + $0xa4] ss:$8 sps:$4 sm:$0xff]   ;;  %v593_v51 = vld [vmem:[%s818_s3 + $0xa0] ss:$8 sps:$4 sm:$0xff]  }
  0x11   :  { %v594_v52 = vld [vmem:[%s818_s3 + $0xb4] ss:$8 sps:$4 sm:$0xff]   ;;  %v596_v53 = vld [vmem:[%s818_s3 + $0xb0] ss:$8 sps:$4 sm:$0xff]   ;;  %v597_v54 = vld [vmem:[%s818_s3 + $0xc4] ss:$8 sps:$4 sm:$0xff]  }
  0x12   :  { %v599_v55 = vld [vmem:[%s818_s3 + $0xc0] ss:$8 sps:$4 sm:$0xff]   ;;  %v600_v56 = vld [vmem:[%s818_s3 + $0xd4] ss:$8 sps:$4 sm:$0xff]   ;;  %v602_v57 = vld [vmem:[%s818_s3 + $0xd0] ss:$8 sps:$4 sm:$0xff]  }
  0x13   :  { %185 = vmatpush1.bf16.msra.mxu0 %v543_v9  ;;  %432 = vmatpush1.bf16.msra.mxu1 %v572_v25  ;;  %v603_v58 = vld [vmem:[%s818_s3 + $0xe4] ss:$8 sps:$4 sm:$0xff]   ;;  %v605_v59 = vld [vmem:[%s818_s3 + $0xe0] ss:$8 sps:$4 sm:$0xff]   ;;  %v606_v60 = vld [vmem:[%s818_s3 + $0xf4] ss:$8 sps:$4 sm:$0xff]  }
  0x14   :  { %186 = vmatprep.subr.bf16.mxu0 %v544_v14  ;;  %433 = vmatprep.subr.bf16.mxu1 %v573_v27  ;;  %v608_v61 = vld [vmem:[%s818_s3 + $0xf0] ss:$8 sps:$4 sm:$0xff]   ;;  %v48_v1 = vld [vmem:[%s819_s2] sm:$0x3] }
  0x15   :  { %v53_v3 = vrot.slane %v48_v1, %v52_v0  ;;  %v57_v4 = vrot.slane %v48_v1, %v56_v2  ;;  %v253_v15 = vld [vmem:[%s820_s4] sm:$0x3] }
  0x16   :  { %v258_v16 = vrot.slane %v253_v15, %v52_v0  ;;  %v262_v17 = vrot.slane %v253_v15, %v56_v2 }
  0x17   :  { %187 = vmatpush1.bf16.msra.mxu0 %v546_v18  ;;  %434 = vmatpush1.bf16.msra.mxu1 %v575_v29 }
  0x18   :  { %188 = vmatprep.subr.bf16.mxu0 %v547_v20  ;;  %435 = vmatprep.subr.bf16.mxu1 %v576_v31 }
  0x1b   :  { %189 = vmatpush1.bf16.msra.mxu0 %v549_v22  ;;  %436 = vmatpush1.bf16.msra.mxu1 %v578_v34 }
  0x1c   :  { %190 = vmatprep.subr.bf16.mxu0 %v550_v24  ;;  %437 = vmatprep.subr.bf16.mxu1 %v579_v37 }
  0x1f   :  { %191 = vmatpush1.bf16.msra.mxu0 %v552_v26  ;;  %438 = vmatpush1.bf16.msra.mxu1 %v581_v41 }
  0x20   :  { %192 = vmatprep.subr.bf16.mxu0 %v553_v28  ;;  %439 = vmatprep.subr.bf16.mxu1 %v582_v42 }
  0x23   :  { %193 = vmatpush1.bf16.msra.mxu0 %v555_v30  ;;  %440 = vmatpush1.bf16.msra.mxu1 %v584_v45 }
  0x24   :  { %194 = vmatprep.subr.bf16.mxu0 %v556_v32  ;;  %441 = vmatprep.subr.bf16.mxu1 %v585_v46 }
  0x27   :  { %195 = vmatpush1.bf16.msra.mxu0 %v558_v35  ;;  %442 = vmatpush1.bf16.msra.mxu1 %v587_v47 }
  0x28   :  { %495 = vmatprep.subr.msk.bf16.mxu0 %vm169_vm1, %v494_v38  ;;  %443 = vmatprep.subr.bf16.mxu1 %v588_v48 }
  0x2b   :  { %197 = vmatpush1.bf16.msra.mxu0 %v171_v43  ;;  %444 = vmatpush1.bf16.msra.mxu1 %v590_v49 }
  0x2c   :  { %445 = vmatprep.subr.bf16.mxu1 %v591_v50 }
  0x2e   :  { %209 = vmatmul.mubr.bf16.vlgmr.msra.gmra.mrb[0].mxu0 %v25_v44 }
  0x2f   :  { %446 = vmatpush1.bf16.msra.mxu1 %v593_v51 }
  0x30   :  { %447 = vmatprep.subr.bf16.mxu1 %v594_v52 }
  0x33   :  { %448 = vmatpush1.bf16.msra.mxu1 %v596_v53 }
  0x34   :  { %449 = vmatprep.subr.bf16.mxu1 %v597_v54 }
  0x37   :  { %450 = vmatpush1.bf16.msra.mxu1 %v599_v55 }
  0x38   :  { %451 = vmatprep.subr.bf16.mxu1 %v600_v56 }
  0x3b   :  { %452 = vmatpush1.bf16.msra.mxu1 %v602_v57 }
  0x3c   :  { %453 = vmatprep.subr.bf16.mxu1 %v603_v58 }
  0x3f   :  { %454 = vmatpush1.bf16.msra.mxu1 %v605_v59 }
  0x40   :  { %455 = vmatprep.subr.bf16.mxu1 %v606_v60 }
  0x43   :  { %456 = vmatpush1.bf16.msra.mxu1 %v608_v61 }
 0x101   :  { %v210_v5 = vpop.f32.mrb[0].mxu0 }
 0x102   :  { %v211_v6 = vadd.f32 %v210_v5, %v53_v3  ;;  %v212_v7 = vpop.f32.mrb[1].mxu0 }
 0x103   :  { %v213_v8 = vadd.f32 %v212_v7, %v57_v4  ;;  %v214_v9 = vpop.f32.mrb[2].mxu0 }
 0x104   :  { %v217_v10 = vmax.f32 %v211_v6, 0.0  ;;  %v215_v11 = vpop.f32.mrb[3].mxu0 }
 0x105   :  { %v218_v12 = vmax.f32 %v213_v8, 0.0 }
 0x106   :  { %v219_v14 = vpack.c.bf16 %v217_v10, %v217_v10 }
 0x107   :  { %v220_v13 = vpack.c.bf16 %v218_v12, %v218_v12 }
 0x109   :  { %457 = vmatprep.mubr.bf16.mxu1 %v220_v13 }
 0x10a   :  { %458 = vmatmul.mubr.bf16.vlgmr.msra.gmra.mrb[0].mxu1 %v219_v14 }
 0x1dd   :  { %v459_v18 = vpop.f32.mrb[0].mxu1 }
 0x1de   :  { %v460_v19 = vadd.f32 %v459_v18, %v258_v16  ;;  %v461_v20 = vpop.f32.mrb[1].mxu1 }
 0x1df   :  { %v462_v21 = vadd.f32 %v461_v20, %v262_v17  ;;  %v463_v22 = vpop.f32.mrb[2].mxu1 }
 0x1e0   :  { %466 = vst [vmem:[%s821_s5] sm:$0xff] %v460_v19  ;;  %v464_v23 = vpop.f32.mrb[3].mxu1 }
 0x1e1   :  { %468 = vst.msk [vmem:[%s821_s5 + $0x8] sm:$0xff] %vm467_vm2, %v462_v21 }

</bundles_post_ra>
